<compile_context>
chip_gen: v7x
topology: tpu7x:2x2x1
jax: 0.10.0
libtpu: 0.0.40
codegen_flags: <defaults>
</compile_context>

<pallas_src>
import functools

import jax
import jax.numpy as jnp
from jax.experimental import pallas as pl
from jax.experimental.pallas import tpu as pltpu


# ------------------------------ Pallas kernels ------------------------------ #

def _gemm_kernel(a_ref, w_ref, shift_ref, o_ref, acc_ref, *, relu):
    """out = act(a @ w + shift), K-tiled with f32 accumulator."""
    k = pl.program_id(2)

    @pl.when(k == 0)
    def _():
        acc_ref[...] = jnp.zeros_like(acc_ref)

    acc_ref[...] += jnp.dot(a_ref[...], w_ref[...],
                            preferred_element_type=jnp.float32)

    @pl.when(k == pl.num_programs(2) - 1)
    def _():
        out = acc_ref[...] + shift_ref[...]
        if relu:
            out = jnp.maximum(out, 0.0)
        o_ref[...] = out.astype(o_ref.dtype)


def _gemm_res_kernel(a_ref, w_ref, shift_ref, res_ref, o_ref, acc_ref):
    """out = relu(a @ w + shift + residual)  (identity-shortcut conv3)."""
    k = pl.program_id(2)

    @pl.when(k == 0)
    def _():
        acc_ref[...] = jnp.zeros_like(acc_ref)

    acc_ref[...] += jnp.dot(a_ref[...], w_ref[...],
                            preferred_element_type=jnp.float32)

    @pl.when(k == pl.num_programs(2) - 1)
    def _():
        out = acc_ref[...] + shift_ref[...] + res_ref[...].astype(jnp.float32)
        o_ref[...] = jnp.maximum(out, 0.0).astype(o_ref.dtype)


def _gemm2_kernel(a_ref, w_ref, a2_ref, w2_ref, shift_ref, o_ref, acc_ref):
    """out = relu(a @ w + a2 @ w2 + shift)  (conv3 fused with projection shortcut)."""
    k = pl.program_id(2)

    @pl.when(k == 0)
    def _():
        # Shortcut GEMM initializes the accumulator (full K2 per tile).
        acc_ref[...] = jnp.dot(a2_ref[...], w2_ref[...],
                               preferred_element_type=jnp.float32)

    acc_ref[...] += jnp.dot(a_ref[...], w_ref[...],
                            preferred_element_type=jnp.float32)

    @pl.when(k == pl.num_programs(2) - 1)
    def _():
        out = acc_ref[...] + shift_ref[...]
        o_ref[...] = jnp.maximum(out, 0.0).astype(o_ref.dtype)


# ------------------------------- GEMM wrapper ------------------------------- #

def _round_up(x, m):
    return (x + m - 1) // m * m


def _pad2d(x, rows, cols):
    r, c = x.shape
    if r == rows and c == cols:
        return x
    return jnp.pad(x, ((0, rows - r), (0, cols - c)))


def fused_gemm(a, w, shift, *, residual=None, a2=None, w2=None,
               relu=True, out_dtype=jnp.bfloat16):
    """Tiled MXU GEMM with fused BN shift / ReLU / residual / second GEMM.

    a: (M, K)  activations (any float dtype; cast to bf16)
    w: (K, N)  weights with BN scale pre-folded (cast to bf16)
    shift: (N,) or (1, N)  f32 per-output-channel shift
    residual: optional (M, N)  added before ReLU
    a2, w2:   optional (M, K2), (K2, N)  second GEMM summed into the same tile
    """
    M, K = a.shape
    Kw, N = w.shape
    assert K == Kw

    # ---- tile / padding selection (lane-dense N, (8,128)-legal blocks) ----
    Np = _round_up(N, 128)
    tn = 256 if Np % 256 == 0 else 128
    Kp = _round_up(K, 128)
    tk = 512 if Kp % 512 == 0 else (256 if Kp % 256 == 0 else 128)
    tm = min(256, _round_up(M, 8))
    Mp = _round_up(M, tm)

    a_p = _pad2d(a.astype(jnp.bfloat16), Mp, Kp)
    w_p = _pad2d(w.astype(jnp.bfloat16), Kp, Np)
    shift_p = _pad2d(jnp.reshape(shift, (1, N)).astype(jnp.float32), 1, Np)

    grid = (Mp // tm, Np // tn, Kp // tk)

    a_spec = pl.BlockSpec((tm, tk), lambda i, j, k: (i, k))
    w_spec = pl.BlockSpec((tk, tn), lambda i, j, k: (k, j))
    s_spec = pl.BlockSpec((1, tn), lambda i, j, k: (0, j))
    o_spec = pl.BlockSpec((tm, tn), lambda i, j, k: (i, j))
    scratch = [pltpu.VMEM((tm, tn), jnp.float32)]
    out_shape = jax.ShapeDtypeStruct((Mp, Np), out_dtype)
    cparams = pltpu.CompilerParams(
        dimension_semantics=("parallel", "parallel", "arbitrary"))

    out_bytes = Mp * Np * jnp.dtype(out_dtype).itemsize
    flops = 2 * Mp * Np * Kp
    bytes_accessed = int(a_p.size) * 2 + int(w_p.size) * 2 + \
        int(shift_p.size) * 4 + out_bytes

    if a2 is not None:
        M2, K2 = a2.shape
        K2w, N2 = w2.shape
        assert M2 == M and K2 == K2w and N2 == N
        K2p = _round_up(K2, 128)
        a2_p = _pad2d(a2.astype(jnp.bfloat16), Mp, K2p)
        w2_p = _pad2d(w2.astype(jnp.bfloat16), K2p, Np)
        flops += 2 * Mp * Np * K2p
        bytes_accessed += int(a2_p.size) * 2 + int(w2_p.size) * 2
        out = pl.pallas_call(
            _gemm2_kernel,
            out_shape=out_shape,
            grid_spec=pltpu.PrefetchScalarGridSpec(
                num_scalar_prefetch=0, grid=grid,
                in_specs=[a_spec, w_spec,
                          pl.BlockSpec((tm, K2p), lambda i, j, k: (i, 0)),
                          pl.BlockSpec((K2p, tn), lambda i, j, k: (0, j)),
                          s_spec],
                out_specs=o_spec,
                scratch_shapes=scratch),
            compiler_params=cparams,
            cost_estimate=pl.CostEstimate(
                flops=flops, transcendentals=0, bytes_accessed=bytes_accessed),
        )(a_p, w_p, a2_p, w2_p, shift_p)
    elif residual is not None:
        r_p = _pad2d(residual.astype(jnp.bfloat16), Mp, Np)
        bytes_accessed += int(r_p.size) * 2
        out = pl.pallas_call(
            _gemm_res_kernel,
            out_shape=out_shape,
            grid_spec=pltpu.PrefetchScalarGridSpec(
                num_scalar_prefetch=0, grid=grid,
                in_specs=[a_spec, w_spec, s_spec,
                          pl.BlockSpec((tm, tn), lambda i, j, k: (i, j))],
                out_specs=o_spec,
                scratch_shapes=scratch),
            compiler_params=cparams,
            cost_estimate=pl.CostEstimate(
                flops=flops, transcendentals=0, bytes_accessed=bytes_accessed),
        )(a_p, w_p, shift_p, r_p)
    else:
        out = pl.pallas_call(
            functools.partial(_gemm_kernel, relu=relu),
            out_shape=out_shape,
            grid_spec=pltpu.PrefetchScalarGridSpec(
                num_scalar_prefetch=0, grid=grid,
                in_specs=[a_spec, w_spec, s_spec],
                out_specs=o_spec,
                scratch_shapes=scratch),
            compiler_params=cparams,
            cost_estimate=pl.CostEstimate(
                flops=flops, transcendentals=0, bytes_accessed=bytes_accessed),
        )(a_p, w_p, shift_p)

    return out[:M, :N]


# ------------------------------- glue / params ------------------------------ #

def quat_weight(key, out_q, in_q, kh, kw, scale=0.1):
    """Build the (4*out_q, 4*in_q, kh, kw) Hamilton-product block weight."""
    kr, ki, kj, kk = jax.random.split(key, 4)
    r = scale * jax.random.normal(kr, (out_q, in_q, kh, kw), jnp.float32)
    i = scale * jax.random.normal(ki, (out_q, in_q, kh, kw), jnp.float32)
    j = scale * jax.random.normal(kj, (out_q, in_q, kh, kw), jnp.float32)
    k = scale * jax.random.normal(kk, (out_q, in_q, kh, kw), jnp.float32)
    row0 = jnp.concatenate([r, -i, -j, -k], axis=1)
    row1 = jnp.concatenate([i,  r, -k,  j], axis=1)
    row2 = jnp.concatenate([j,  k,  r, -i], axis=1)
    row3 = jnp.concatenate([k, -j,  i,  r], axis=1)
    return jnp.concatenate([row0, row1, row2, row3], axis=0)


def _bn_fold(kg, kb, c, eps=1e-5):
    # Inference-mode BatchNorm folded to per-channel scale/shift.
    gamma = 1.0 + 0.1 * jax.random.normal(kg, (c,), jnp.float32)
    beta = 0.1 * jax.random.normal(kb, (c,), jnp.float32)
    rmean = jnp.zeros((c,), jnp.float32)
    rvar = jnp.ones((c,), jnp.float32)
    scale = gamma / jnp.sqrt(rvar + eps)
    shift = beta - rmean * scale
    return scale.reshape(1, c), shift.reshape(1, c)


def make_params(key, in_planes, planes, stride):
    expansion = 4
    keys = jax.random.split(key, 12)
    p = {
        "W1": quat_weight(keys[0], planes // 4, in_planes // 4, 1, 1),
        "W2": quat_weight(keys[1], planes // 4, planes // 4, 3, 3),
        "W3": quat_weight(keys[2], expansion * planes // 4, planes // 4, 1, 1),
    }
    p["s1"], p["b1"] = _bn_fold(keys[3], keys[4], planes)
    p["s2"], p["b2"] = _bn_fold(keys[5], keys[6], planes)
    p["s3"], p["b3"] = _bn_fold(keys[7], keys[8], expansion * planes)
    if stride != 1 or in_planes != expansion * planes:
        p["Wsc"] = quat_weight(keys[9], expansion * planes // 4,
                               in_planes // 4, 1, 1)
        p["ssc"], p["bsc"] = _bn_fold(keys[10], keys[11], expansion * planes)
    return p


def prepare_gemm_params(p):
    """Fold BN scale into GEMM-layout weights, cast to bf16 (host precompute)."""
    planes = p["s1"].shape[1]
    gp = {}
    w1 = p["W1"][:, :, 0, 0].T                                     # (Cin, planes)
    gp["w1"] = (w1 * p["s1"]).astype(jnp.bfloat16)
    gp["b1"] = p["b1"].astype(jnp.float32)

    w2 = jnp.transpose(p["W2"], (2, 3, 1, 0)).reshape(9 * planes, planes)
    gp["w2"] = (w2 * p["s2"]).astype(jnp.bfloat16)
    gp["b2"] = p["b2"].astype(jnp.float32)

    w3 = p["W3"][:, :, 0, 0].T                                     # (planes, 4*planes)
    gp["w3"] = (w3 * p["s3"]).astype(jnp.bfloat16)

    if "Wsc" in p:
        wsc = p["Wsc"][:, :, 0, 0].T                               # (Cin, 4*planes)
        gp["wsc"] = (wsc * p["ssc"]).astype(jnp.bfloat16)
        gp["b3"] = (p["b3"] + p["bsc"]).astype(jnp.float32)        # combined shift
    else:
        gp["b3"] = p["b3"].astype(jnp.float32)
    return gp


def _im2col_3x3(x_nhwc, stride):
    N, H, W, C = x_nhwc.shape
    xp = jnp.pad(x_nhwc, ((0, 0), (1, 1), (1, 1), (0, 0)))
    Ho = (H + 2 - 3) // stride + 1
    Wo = (W + 2 - 3) // stride + 1
    cols = []
    for ky in range(3):
        for kx in range(3):
            cols.append(
                xp[:, ky:ky + stride * (Ho - 1) + 1:stride,
                      kx:kx + stride * (Wo - 1) + 1:stride, :])
    return jnp.concatenate(cols, axis=-1), Ho, Wo     # (N, Ho, Wo, 9*C)


def bottleneck_forward(x_nchw, gp, stride):
    """Pallas-backed forward. x_nchw: (N, C, H, W) f32 -> (N, 4*planes, Ho, Wo) f32."""
    N, C, H, W = x_nchw.shape
    planes = gp["w1"].shape[1]
    out_c = gp["w3"].shape[1]                                    # 4 * planes
    xh = jnp.transpose(x_nchw, (0, 2, 3, 1)).astype(jnp.bfloat16)  # NHWC bf16

    # conv1 (1x1) + bn1 + relu
    a1 = xh.reshape(N * H * W, C)
    o1 = fused_gemm(a1, gp["w1"], gp["b1"], relu=True)           # bf16 (M, planes)
    o1 = o1.reshape(N, H, W, planes)

    # conv2 (3x3, stride, pad=1) + bn2 + relu  (im2col glue in bf16, GEMM in Pallas)
    patches, Ho, Wo = _im2col_3x3(o1, stride)
    a2 = patches.reshape(N * Ho * Wo, 9 * planes)
    o2 = fused_gemm(a2, gp["w2"], gp["b2"], relu=True)           # bf16 (M2, planes)

    # conv3 (1x1) + bn3 + shortcut + relu, fully fused in one kernel
    if "wsc" in gp:
        xs = xh[:, ::stride, ::stride, :].reshape(N * Ho * Wo, C)
        o3 = fused_gemm(o2, gp["w3"], gp["b3"], a2=xs, w2=gp["wsc"],
                        relu=True, out_dtype=jnp.float32)
    else:
        res = xh.reshape(N * Ho * Wo, C)                         # C == 4*planes
        o3 = fused_gemm(o2, gp["w3"], gp["b3"], residual=res,
                        relu=True, out_dtype=jnp.float32)

    out = o3.reshape(N, Ho, Wo, out_c)
    return jnp.transpose(out, (0, 3, 1, 2))                      # back to NCHW


# ------------------------------ pure-JAX reference --------------------------- #

def _conv_ref(x, w, stride, pad):
    return jax.lax.conv_general_dilated(
        x, w, (stride, stride), [(pad, pad), (pad, pad)],
        dimension_numbers=("NCHW", "OIHW", "NCHW"))


def bottleneck_ref(x, p, stride):
    def bn(y, s, b):
        return y * s[0].reshape(1, -1, 1, 1) + b[0].reshape(1, -1, 1, 1)
    o = jax.nn.relu(bn(_conv_ref(x, p["W1"], 1, 0), p["s1"], p["b1"]))
    o = jax.nn.relu(bn(_conv_ref(o, p["W2"], stride, 1), p["s2"], p["b2"]))
    o = bn(_conv_ref(o, p["W3"], 1, 0), p["s3"], p["b3"])
    if "Wsc" in p:
        sc = bn(_conv_ref(x, p["Wsc"], stride, 0), p["ssc"], p["bsc"])
    else:
        sc = x
    return jax.nn.relu(o + sc)


# ------------------------------------ main ----------------------------------- #

if __name__ == "__main__":
    key = jax.random.PRNGKey(0)
    N, H, W = 2, 8, 8

    configs = [
        (16, 16, 2),   # projection-shortcut path (stride != 1)
        (64, 16, 1),   # identity-shortcut path (in_planes == 4*planes, stride 1)
    ]

    fwd = jax.jit(bottleneck_forward, static_argnums=2)

    for in_planes, planes, stride in configs:
        kx, kp, key = jax.random.split(key, 3)
        x = jax.random.normal(kx, (N, in_planes, H, W), jnp.float32)
        p = make_params(kp, in_planes, planes, stride)
        gp = prepare_gemm_params(p)

        out = jax.block_until_ready(fwd(x, gp, stride))
        ref = jax.block_until_ready(bottleneck_ref(x, p, stride))

        Ho = (H + 2 - 3) // stride + 1
        assert out.shape == (N, 4 * planes, Ho, Ho), out.shape
        assert jnp.all(jnp.isfinite(out))
        max_err = float(jnp.max(jnp.abs(out - ref)))
        assert jnp.allclose(out, ref, atol=5e-2, rtol=5e-2), max_err

    print("KERNEL_OK")
</pallas_src>

<mosaic_0001>
module attributes {stable_mosaic.version = 11 : i64} {
  func.func @_gemm_kernel(%arg0: i32, %arg1: i32, %arg2: i32, %arg3: memref<128x128xbf16, #tpu.memory_space<vmem>>, %arg4: memref<128x128xbf16, #tpu.memory_space<vmem>>, %arg5: memref<1x128xf32, #tpu.memory_space<vmem>>, %arg6: memref<128x128xbf16, #tpu.memory_space<vmem>>, %arg7: memref<128x128xf32, #tpu.memory_space<vmem>>) attributes {dimension_semantics = [#tpu.dimension_semantics<parallel>, #tpu.dimension_semantics<parallel>, #tpu.dimension_semantics<arbitrary>], iteration_bounds = array<i64: 1, 1, 1>, scalar_prefetch = 0 : i64, scratch_operands = 1 : i64, tpu.core_type = #tpu.core_type<tc>, window_params = [{transform_indices = @transform_0, window_bounds = array<i64: 128, 128>}, {transform_indices = @transform_1, window_bounds = array<i64: 128, 128>}, {transform_indices = @transform_2, window_bounds = array<i64: 1, 128>}, {transform_indices = @transform_3, window_bounds = array<i64: 128, 128>}]} {
    %c0_i32 = arith.constant 0 : i32
    %0 = arith.cmpi eq, %arg2, %c0_i32 : i32
    %1 = arith.extui %0 : i1 to i32
    %c0_i32_0 = arith.constant 0 : i32
    %2 = arith.cmpi ne, %1, %c0_i32_0 : i32
    scf.if %2 {
      %cst_10 = arith.constant 0.000000e+00 : f32
      %12 = vector.broadcast %cst_10 : f32 to vector<128x128xf32>
      %c0_11 = arith.constant 0 : index
      %c0_12 = arith.constant 0 : index
      %13 = vector.load %arg7[%c0_11, %c0_12] : memref<128x128xf32, #tpu.memory_space<vmem>>, vector<128x128xf32>
      tpu.vector_store %arg7[%c0_11, %c0_12], %12 {strides = array<i32>} : memref<128x128xf32, #tpu.memory_space<vmem>>, vector<128x128xf32>,
    } else {
    }
    %c0 = arith.constant 0 : index
    %c0_1 = arith.constant 0 : index
    %3 = vector.load %arg7[%c0, %c0_1] : memref<128x128xf32, #tpu.memory_space<vmem>>, vector<128x128xf32>
    %c0_2 = arith.constant 0 : index
    %c0_3 = arith.constant 0 : index
    %4 = vector.load %arg3[%c0_2, %c0_3] : memref<128x128xbf16, #tpu.memory_space<vmem>>, vector<128x128xbf16>
    %c0_4 = arith.constant 0 : index
    %c0_5 = arith.constant 0 : index
    %5 = vector.load %arg4[%c0_4, %c0_5] : memref<128x128xbf16, #tpu.memory_space<vmem>>, vector<128x128xbf16>
    %cst = arith.constant dense<0.000000e+00> : vector<128x128xf32>
    %6 = tpu.matmul %4, %5, %cst {dimension_numbers = #tpu.dot_dimension_numbers<[1], [0], [0], [1], [0, 0, 1, 1], [], []>} : vector<128x128xbf16>, vector<128x128xbf16>, vector<128x128xf32> -> vector<128x128xf32>
    %7 = arith.addf %3, %6 : vector<128x128xf32>
    %c0_6 = arith.constant 0 : index
    %c0_7 = arith.constant 0 : index
    %8 = vector.load %arg7[%c0_6, %c0_7] : memref<128x128xf32, #tpu.memory_space<vmem>>, vector<128x128xf32>
    tpu.vector_store %arg7[%c0_6, %c0_7], %7 {strides = array<i32>} : memref<128x128xf32, #tpu.memory_space<vmem>>, vector<128x128xf32>,
    %c0_i32_8 = arith.constant 0 : i32
    %9 = arith.cmpi eq, %arg2, %c0_i32_8 : i32
    %10 = arith.extui %9 : i1 to i32
    %c0_i32_9 = arith.constant 0 : i32
    %11 = arith.cmpi ne, %10, %c0_i32_9 : i32
    scf.if %11 {
      %c0_10 = arith.constant 0 : index
      %c0_11 = arith.constant 0 : index
      %12 = vector.load %arg7[%c0_10, %c0_11] : memref<128x128xf32, #tpu.memory_space<vmem>>, vector<128x128xf32>
      %c0_12 = arith.constant 0 : index
      %c0_13 = arith.constant 0 : index
      %13 = vector.load %arg5[%c0_12, %c0_13] : memref<1x128xf32, #tpu.memory_space<vmem>>, vector<1x128xf32>
      %14 = vector.broadcast %13 : vector<1x128xf32> to vector<128x128xf32>
      %15 = arith.addf %12, %14 : vector<128x128xf32>
      %cst_14 = arith.constant 0.000000e+00 : f32
      %16 = vector.broadcast %cst_14 : f32 to vector<128x128xf32>
      %17 = arith.maximumf %15, %16 : vector<128x128xf32>
      %18 = arith.truncf %17 : vector<128x128xf32> to vector<128x128xbf16>
      %c0_15 = arith.constant 0 : index
      %c0_16 = arith.constant 0 : index
      %19 = vector.load %arg6[%c0_15, %c0_16] : memref<128x128xbf16, #tpu.memory_space<vmem>>, vector<128x128xbf16>
      tpu.vector_store %arg6[%c0_15, %c0_16], %18 {strides = array<i32>} : memref<128x128xbf16, #tpu.memory_space<vmem>>, vector<128x128xbf16>,
    } else {
    }
    return
  }
  func.func @transform_0(%arg0: i32, %arg1: i32, %arg2: i32) -> (i32, i32) {
    %c0_i32 = arith.constant 0 : i32
    return %arg0, %arg2 : i32, i32
  }
  func.func @transform_1(%arg0: i32, %arg1: i32, %arg2: i32) -> (i32, i32) {
    %c0_i32 = arith.constant 0 : i32
    return %arg2, %arg1 : i32, i32
  }
  func.func @transform_2(%arg0: i32, %arg1: i32, %arg2: i32) -> (i32, i32) {
    %c0_i32 = arith.constant 0 : i32
    %c0_i32_0 = arith.constant 0 : i32
    return %c0_i32, %arg1 : i32, i32
  }
  func.func @transform_3(%arg0: i32, %arg1: i32, %arg2: i32) -> (i32, i32) {
    %c0_i32 = arith.constant 0 : i32
    return %arg0, %arg1 : i32, i32
  }
}

module attributes {stable_mosaic.version = 11 : i64} {
  func.func @_gemm_kernel(%arg0: i32, %arg1: i32, %arg2: i32, %arg3: memref<32x256xbf16, #tpu.memory_space<vmem>>, %arg4: memref<256x128xbf16, #tpu.memory_space<vmem>>, %arg5: memref<1x128xf32, #tpu.memory_space<vmem>>, %arg6: memref<32x128xbf16, #tpu.memory_space<vmem>>, %arg7: memref<32x128xf32, #tpu.memory_space<vmem>>) attributes {dimension_semantics = [#tpu.dimension_semantics<parallel>, #tpu.dimension_semantics<parallel>, #tpu.dimension_semantics<arbitrary>], iteration_bounds = array<i64: 1, 1, 1>, scalar_prefetch = 0 : i64, scratch_operands = 1 : i64, tpu.core_type = #tpu.core_type<tc>, window_params = [{transform_indices = @transform_0, window_bounds = array<i64: 32, 256>}, {transform_indices = @transform_1, window_bounds = array<i64: 256, 128>}, {transform_indices = @transform_2, window_bounds = array<i64: 1, 128>}, {transform_indices = @transform_3, window_bounds = array<i64: 32, 128>}]} {
    %c0_i32 = arith.constant 0 : i32
    %0 = arith.cmpi eq, %arg2, %c0_i32 : i32
    %1 = arith.extui %0 : i1 to i32
    %c0_i32_0 = arith.constant 0 : i32
    %2 = arith.cmpi ne, %1, %c0_i32_0 : i32
    scf.if %2 {
      %cst_10 = arith.constant 0.000000e+00 : f32
      %12 = vector.broadcast %cst_10 : f32 to vector<32x128xf32>
      %c0_11 = arith.constant 0 : index
      %c0_12 = arith.constant 0 : index
      %13 = vector.load %arg7[%c0_11, %c0_12] : memref<32x128xf32, #tpu.memory_space<vmem>>, vector<32x128xf32>
      tpu.vector_store %arg7[%c0_11, %c0_12], %12 {strides = array<i32>} : memref<32x128xf32, #tpu.memory_space<vmem>>, vector<32x128xf32>,
    } else {
    }
    %c0 = arith.constant 0 : index
    %c0_1 = arith.constant 0 : index
    %3 = vector.load %arg7[%c0, %c0_1] : memref<32x128xf32, #tpu.memory_space<vmem>>, vector<32x128xf32>
    %c0_2 = arith.constant 0 : index
    %c0_3 = arith.constant 0 : index
    %4 = vector.load %arg3[%c0_2, %c0_3] : memref<32x256xbf16, #tpu.memory_space<vmem>>, vector<32x256xbf16>
    %c0_4 = arith.constant 0 : index
    %c0_5 = arith.constant 0 : index
    %5 = vector.load %arg4[%c0_4, %c0_5] : memref<256x128xbf16, #tpu.memory_space<vmem>>, vector<256x128xbf16>
    %cst = arith.constant dense<0.000000e+00> : vector<32x128xf32>
    %6 = tpu.matmul %4, %5, %cst {dimension_numbers = #tpu.dot_dimension_numbers<[1], [0], [0], [1], [0, 0, 1, 1], [], []>} : vector<32x256xbf16>, vector<256x128xbf16>, vector<32x128xf32> -> vector<32x128xf32>
    %7 = arith.addf %3, %6 : vector<32x128xf32>
    %c0_6 = arith.constant 0 : index
    %c0_7 = arith.constant 0 : index
    %8 = vector.load %arg7[%c0_6, %c0_7] : memref<32x128xf32, #tpu.memory_space<vmem>>, vector<32x128xf32>
    tpu.vector_store %arg7[%c0_6, %c0_7], %7 {strides = array<i32>} : memref<32x128xf32, #tpu.memory_space<vmem>>, vector<32x128xf32>,
    %c0_i32_8 = arith.constant 0 : i32
    %9 = arith.cmpi eq, %arg2, %c0_i32_8 : i32
    %10 = arith.extui %9 : i1 to i32
    %c0_i32_9 = arith.constant 0 : i32
    %11 = arith.cmpi ne, %10, %c0_i32_9 : i32
    scf.if %11 {
      %c0_10 = arith.constant 0 : index
      %c0_11 = arith.constant 0 : index
      %12 = vector.load %arg7[%c0_10, %c0_11] : memref<32x128xf32, #tpu.memory_space<vmem>>, vector<32x128xf32>
      %c0_12 = arith.constant 0 : index
      %c0_13 = arith.constant 0 : index
      %13 = vector.load %arg5[%c0_12, %c0_13] : memref<1x128xf32, #tpu.memory_space<vmem>>, vector<1x128xf32>
      %14 = vector.broadcast %13 : vector<1x128xf32> to vector<32x128xf32>
      %15 = arith.addf %12, %14 : vector<32x128xf32>
      %cst_14 = arith.constant 0.000000e+00 : f32
      %16 = vector.broadcast %cst_14 : f32 to vector<32x128xf32>
      %17 = arith.maximumf %15, %16 : vector<32x128xf32>
      %18 = arith.truncf %17 : vector<32x128xf32> to vector<32x128xbf16>
      %c0_15 = arith.constant 0 : index
      %c0_16 = arith.constant 0 : index
      %19 = vector.load %arg6[%c0_15, %c0_16] : memref<32x128xbf16, #tpu.memory_space<vmem>>, vector<32x128xbf16>
      tpu.vector_store %arg6[%c0_15, %c0_16], %18 {strides = array<i32>} : memref<32x128xbf16, #tpu.memory_space<vmem>>, vector<32x128xbf16>,
    } else {
    }
    return
  }
  func.func @transform_0(%arg0: i32, %arg1: i32, %arg2: i32) -> (i32, i32) {
    %c0_i32 = arith.constant 0 : i32
    return %arg0, %arg2 : i32, i32
  }
  func.func @transform_1(%arg0: i32, %arg1: i32, %arg2: i32) -> (i32, i32) {
    %c0_i32 = arith.constant 0 : i32
    return %arg2, %arg1 : i32, i32
  }
  func.func @transform_2(%arg0: i32, %arg1: i32, %arg2: i32) -> (i32, i32) {
    %c0_i32 = arith.constant 0 : i32
    %c0_i32_0 = arith.constant 0 : i32
    return %c0_i32, %arg1 : i32, i32
  }
  func.func @transform_3(%arg0: i32, %arg1: i32, %arg2: i32) -> (i32, i32) {
    %c0_i32 = arith.constant 0 : i32
    return %arg0, %arg1 : i32, i32
  }
}

module attributes {stable_mosaic.version = 11 : i64} {
  func.func @_gemm2_kernel(%arg0: i32, %arg1: i32, %arg2: i32, %arg3: memref<32x128xbf16, #tpu.memory_space<vmem>>, %arg4: memref<128x128xbf16, #tpu.memory_space<vmem>>, %arg5: memref<32x128xbf16, #tpu.memory_space<vmem>>, %arg6: memref<128x128xbf16, #tpu.memory_space<vmem>>, %arg7: memref<1x128xf32, #tpu.memory_space<vmem>>, %arg8: memref<32x128xf32, #tpu.memory_space<vmem>>, %arg9: memref<32x128xf32, #tpu.memory_space<vmem>>) attributes {dimension_semantics = [#tpu.dimension_semantics<parallel>, #tpu.dimension_semantics<parallel>, #tpu.dimension_semantics<arbitrary>], iteration_bounds = array<i64: 1, 1, 1>, scalar_prefetch = 0 : i64, scratch_operands = 1 : i64, tpu.core_type = #tpu.core_type<tc>, window_params = [{transform_indices = @transform_0, window_bounds = array<i64: 32, 128>}, {transform_indices = @transform_1, window_bounds = array<i64: 128, 128>}, {transform_indices = @transform_2, window_bounds = array<i64: 32, 128>}, {transform_indices = @transform_3, window_bounds = array<i64: 128, 128>}, {transform_indices = @transform_4, window_bounds = array<i64: 1, 128>}, {transform_indices = @transform_5, window_bounds = array<i64: 32, 128>}]} {
    %c0_i32 = arith.constant 0 : i32
    %0 = arith.cmpi eq, %arg2, %c0_i32 : i32
    %1 = arith.extui %0 : i1 to i32
    %c0_i32_0 = arith.constant 0 : i32
    %2 = arith.cmpi ne, %1, %c0_i32_0 : i32
    scf.if %2 {
      %c0_10 = arith.constant 0 : index
      %c0_11 = arith.constant 0 : index
      %12 = vector.load %arg5[%c0_10, %c0_11] : memref<32x128xbf16, #tpu.memory_space<vmem>>, vector<32x128xbf16>
      %c0_12 = arith.constant 0 : index
      %c0_13 = arith.constant 0 : index
      %13 = vector.load %arg6[%c0_12, %c0_13] : memref<128x128xbf16, #tpu.memory_space<vmem>>, vector<128x128xbf16>
      %cst_14 = arith.constant dense<0.000000e+00> : vector<32x128xf32>
      %14 = tpu.matmul %12, %13, %cst_14 {dimension_numbers = #tpu.dot_dimension_numbers<[1], [0], [0], [1], [0, 0, 1, 1], [], []>} : vector<32x128xbf16>, vector<128x128xbf16>, vector<32x128xf32> -> vector<32x128xf32>
      %c0_15 = arith.constant 0 : index
      %c0_16 = arith.constant 0 : index
      %15 = vector.load %arg9[%c0_15, %c0_16] : memref<32x128xf32, #tpu.memory_space<vmem>>, vector<32x128xf32>
      tpu.vector_store %arg9[%c0_15, %c0_16], %14 {strides = array<i32>} : memref<32x128xf32, #tpu.memory_space<vmem>>, vector<32x128xf32>,
    } else {
    }
    %c0 = arith.constant 0 : index
    %c0_1 = arith.constant 0 : index
    %3 = vector.load %arg9[%c0, %c0_1] : memref<32x128xf32, #tpu.memory_space<vmem>>, vector<32x128xf32>
    %c0_2 = arith.constant 0 : index
    %c0_3 = arith.constant 0 : index
    %4 = vector.load %arg3[%c0_2, %c0_3] : memref<32x128xbf16, #tpu.memory_space<vmem>>, vector<32x128xbf16>
    %c0_4 = arith.constant 0 : index
    %c0_5 = arith.constant 0 : index
    %5 = vector.load %arg4[%c0_4, %c0_5] : memref<128x128xbf16, #tpu.memory_space<vmem>>, vector<128x128xbf16>
    %cst = arith.constant dense<0.000000e+00> : vector<32x128xf32>
    %6 = tpu.matmul %4, %5, %cst {dimension_numbers = #tpu.dot_dimension_numbers<[1], [0], [0], [1], [0, 0, 1, 1], [], []>} : vector<32x128xbf16>, vector<128x128xbf16>, vector<32x128xf32> -> vector<32x128xf32>
    %7 = arith.addf %3, %6 : vector<32x128xf32>
    %c0_6 = arith.constant 0 : index
    %c0_7 = arith.constant 0 : index
    %8 = vector.load %arg9[%c0_6, %c0_7] : memref<32x128xf32, #tpu.memory_space<vmem>>, vector<32x128xf32>
    tpu.vector_store %arg9[%c0_6, %c0_7], %7 {strides = array<i32>} : memref<32x128xf32, #tpu.memory_space<vmem>>, vector<32x128xf32>,
    %c0_i32_8 = arith.constant 0 : i32
    %9 = arith.cmpi eq, %arg2, %c0_i32_8 : i32
    %10 = arith.extui %9 : i1 to i32
    %c0_i32_9 = arith.constant 0 : i32
    %11 = arith.cmpi ne, %10, %c0_i32_9 : i32
    scf.if %11 {
      %c0_10 = arith.constant 0 : index
      %c0_11 = arith.constant 0 : index
      %12 = vector.load %arg9[%c0_10, %c0_11] : memref<32x128xf32, #tpu.memory_space<vmem>>, vector<32x128xf32>
      %c0_12 = arith.constant 0 : index
      %c0_13 = arith.constant 0 : index
      %13 = vector.load %arg7[%c0_12, %c0_13] : memref<1x128xf32, #tpu.memory_space<vmem>>, vector<1x128xf32>
      %14 = vector.broadcast %13 : vector<1x128xf32> to vector<32x128xf32>
      %15 = arith.addf %12, %14 : vector<32x128xf32>
      %cst_14 = arith.constant 0.000000e+00 : f32
      %16 = vector.broadcast %cst_14 : f32 to vector<32x128xf32>
      %17 = arith.maximumf %15, %16 : vector<32x128xf32>
      %c0_15 = arith.constant 0 : index
      %c0_16 = arith.constant 0 : index
      %18 = vector.load %arg8[%c0_15, %c0_16] : memref<32x128xf32, #tpu.memory_space<vmem>>, vector<32x128xf32>
      tpu.vector_store %arg8[%c0_15, %c0_16], %17 {strides = array<i32>} : memref<32x128xf32, #tpu.memory_space<vmem>>, vector<32x128xf32>,
    } else {
    }
    return
  }
  func.func @transform_0(%arg0: i32, %arg1: i32, %arg2: i32) -> (i32, i32) {
    %c0_i32 = arith.constant 0 : i32
    return %arg0, %arg2 : i32, i32
  }
  func.func @transform_1(%arg0: i32, %arg1: i32, %arg2: i32) -> (i32, i32) {
    %c0_i32 = arith.constant 0 : i32
    return %arg2, %arg1 : i32, i32
  }
  func.func @transform_2(%arg0: i32, %arg1: i32, %arg2: i32) -> (i32, i32) {
    %c0_i32 = arith.constant 0 : i32
    %c0_i32_0 = arith.constant 0 : i32
    return %arg0, %c0_i32 : i32, i32
  }
  func.func @transform_3(%arg0: i32, %arg1: i32, %arg2: i32) -> (i32, i32) {
    %c0_i32 = arith.constant 0 : i32
    %c0_i32_0 = arith.constant 0 : i32
    return %c0_i32, %arg1 : i32, i32
  }
  func.func @transform_4(%arg0: i32, %arg1: i32, %arg2: i32) -> (i32, i32) {
    %c0_i32 = arith.constant 0 : i32
    %c0_i32_0 = arith.constant 0 : i32
    return %c0_i32, %arg1 : i32, i32
  }
  func.func @transform_5(%arg0: i32, %arg1: i32, %arg2: i32) -> (i32, i32) {
    %c0_i32 = arith.constant 0 : i32
    return %arg0, %arg1 : i32, i32
  }
}

</mosaic_0001>

<bundles_post_ra>
// kernel: bottleneck_forward.3
= control target key start
LH: loop header
LB: loop body
LE: loop exit
PB: predicated region body
PF: predicated region fallthrough
CT: control target
= control target key end

     0   :  { %s721_s1 = inlined_call_operand.vmem [shape: bf16[128,128], index: 1, kind: input, shape index: {}]   ;;  %s722_s0 = inlined_call_operand.vmem [shape: bf16[128,128], index: 0, kind: input, shape index: {}]   ;;  %s723_s2 = inlined_call_operand.vmem [shape: f32[1,128], index: 2, kind: input, shape index: {}]   ;;  %s724_s3 = inlined_call_operand.vmem [shape: bf16[128,128], index: 3, kind: output, shape index: {}]  }
   0x1   :  { %v610_v0 = vld [vmem:[%s721_s1] sm:$0xff]   ;;  %v611_v1 = vld [vmem:[%s721_s1 + $0x8] sm:$0xff]   ;;  %v612_v2 = vld [vmem:[%s721_s1 + $0x10] sm:$0xff]  }
   0x2   :  { %562 = vmatprep.subr.bf16.mxu0 %v610_v0  ;;  %594 = vmatprep.subr.bf16.mxu1 %v610_v0  ;;  %v613_v3 = vld [vmem:[%s721_s1 + $0x18] sm:$0xff]   ;;  %v618_v4 = vld [vmem:[%s722_s0] sm:$0xff]   ;;  %v615_v7 = vld [vmem:[%s721_s1 + $0x28] sm:$0xff]  }
   0x3   :  { %563 = vmatpush3.bf16.msra.mxu0 %v610_v0  ;;  %602 = vmatpush3.bf16.msra.mxu1 %v610_v0  ;;  %v619_v5 = vld [vmem:[%s722_s0 + $0x20] sm:$0xff]   ;;  %v616_v8 = vld [vmem:[%s721_s1 + $0x30] sm:$0xff]   ;;  %v617_v9 = vld [vmem:[%s721_s1 + $0x38] sm:$0xff]  }
   0x4   :  { %564 = vmatprep.subr.bf16.mxu0 %v611_v1  ;;  %595 = vmatprep.subr.bf16.mxu1 %v611_v1  ;;  %v614_v6 = vld [vmem:[%s721_s1 + $0x20] sm:$0xff]   ;;  %v620_v10 = vld [vmem:[%s722_s0 + $0x8] sm:$0xff]   ;;  %v622_v12 = vld [vmem:[%s722_s0 + $0x10] sm:$0xff]  }
   0x5   :  { %578 = vmatprep.mubr.bf16.mxu0 %v618_v4  ;;  %586 = vmatprep.mubr.bf16.mxu1 %v619_v5  ;;  %v621_v11 = vld [vmem:[%s722_s0 + $0x28] sm:$0xff]   ;;  %v623_v13 = vld [vmem:[%s722_s0 + $0x30] sm:$0xff]   ;;  %v624_v14 = vld [vmem:[%s722_s0 + $0x18] sm:$0xff]  }
   0x6   :  { %v625_v15 = vld [vmem:[%s722_s0 + $0x38] sm:$0xff]   ;;  %v466_v16 = vld [vmem:[%s723_s2] ss:$0 sm:$0xff] }
   0x7   :  { %565 = vmatpush3.bf16.msra.mxu0 %v611_v1  ;;  %603 = vmatpush3.bf16.msra.mxu1 %v611_v1 }
   0x8   :  { %566 = vmatprep.subr.bf16.mxu0 %v612_v2  ;;  %596 = vmatprep.subr.bf16.mxu1 %v612_v2 }
   0xb   :  { %567 = vmatpush3.bf16.msra.mxu0 %v612_v2  ;;  %604 = vmatpush3.bf16.msra.mxu1 %v612_v2 }
   0xc   :  { %568 = vmatprep.subr.bf16.mxu0 %v613_v3  ;;  %597 = vmatprep.subr.bf16.mxu1 %v613_v3 }
   0xf   :  { %569 = vmatpush3.bf16.msra.mxu0 %v613_v3  ;;  %605 = vmatpush3.bf16.msra.mxu1 %v613_v3 }
  0x10   :  { %570 = vmatprep.subr.bf16.mxu0 %v614_v6  ;;  %598 = vmatprep.subr.bf16.mxu1 %v614_v6 }
  0x13   :  { %571 = vmatpush3.bf16.msra.mxu0 %v614_v6  ;;  %606 = vmatpush3.bf16.msra.mxu1 %v614_v6 }
  0x14   :  { %572 = vmatprep.subr.bf16.mxu0 %v615_v7  ;;  %599 = vmatprep.subr.bf16.mxu1 %v615_v7 }
  0x17   :  { %573 = vmatpush3.bf16.msra.mxu0 %v615_v7  ;;  %607 = vmatpush3.bf16.msra.mxu1 %v615_v7 }
  0x18   :  { %574 = vmatprep.subr.bf16.mxu0 %v616_v8  ;;  %600 = vmatprep.subr.bf16.mxu1 %v616_v8 }
  0x1b   :  { %575 = vmatpush3.bf16.msra.mxu0 %v616_v8  ;;  %608 = vmatpush3.bf16.msra.mxu1 %v616_v8 }
  0x1c   :  { %576 = vmatprep.subr.bf16.mxu0 %v617_v9  ;;  %601 = vmatprep.subr.bf16.mxu1 %v617_v9 }
  0x1f   :  { %577 = vmatpush3.bf16.msra.mxu0 %v617_v9  ;;  %609 = vmatpush3.bf16.msra.mxu1 %v617_v9 }
  0x22   :  { %579 = vmatmul.mubr.bf16.vlgmr.msra.gmra.mrb[0].mxu0 %v620_v10  ;;  %587 = vmatmul.mubr.bf16.vlgmr.msra.gmra.mrb[0].mxu1 %v621_v11 }
  0x23   :  { %582 = vmatprep.mubr.bf16.mxu0 %v622_v12  ;;  %590 = vmatprep.mubr.bf16.mxu1 %v623_v13 }
  0x2a   :  { %583 = vmatmul.mubr.bf16.gmra.mrb[4].mxu0 %v624_v14  ;;  %591 = vmatmul.mubr.bf16.gmra.mrb[4].mxu1 %v625_v15 }
  0xf5   :  { %v580_v17 = vpop.f32.mrb[0].mxu0  ;;  %v588_v18 = vpop.f32.mrb[0].mxu1 }
  0xf6   :  { %v336_v19 = vadd.f32 %v580_v17, %v466_v16  ;;  %v344_v20 = vadd.f32 %v588_v18, %v466_v16  ;;  %v213_v21 = vpop.f32.mrb[1].mxu0  ;;  %v245_v22 = vpop.f32.mrb[1].mxu1 }
  0xf7   :  { %v334_v23 = vadd.f32 %v466_v16, %v213_v21  ;;  %v342_v24 = vadd.f32 %v466_v16, %v245_v22  ;;  %v581_v25 = vpop.f32.mrb[2].mxu0  ;;  %v589_v26 = vpop.f32.mrb[2].mxu1 }
  0xf8   :  { %v337_v27 = vadd.f32 %v581_v25, %v466_v16  ;;  %v345_v28 = vadd.f32 %v589_v26, %v466_v16  ;;  %v216_v29 = vpop.f32.mrb[3].mxu0  ;;  %v248_v30 = vpop.f32.mrb[3].mxu1  ;;  %v352_v33 = vmax.f32 %v336_v19, 0.0  ;;  %v360_v34 = vmax.f32 %v344_v20, 0.0 }
  0xf9   :  { %v335_v31 = vadd.f32 %v466_v16, %v216_v29  ;;  %v343_v32 = vadd.f32 %v466_v16, %v248_v30  ;;  %v350_v37 = vmax.f32 %v334_v23, 0.0  ;;  %v358_v38 = vmax.f32 %v342_v24, 0.0 }
  0xfa   :  { %v353_v35 = vmax.f32 %v337_v27, 0.0  ;;  %v361_v36 = vmax.f32 %v345_v28, 0.0 }
  0xfb   :  { %v351_v39 = vmax.f32 %v335_v31, 0.0  ;;  %v359_v40 = vmax.f32 %v343_v32, 0.0 }
  0xfc   :  { %v507_v41 = vpack.c.bf16 %v353_v35, %v352_v33  ;;  %v527_v42 = vpack.c.bf16 %v361_v36, %v360_v34 }
  0xfd   :  { %v502_v43 = vpack.c.bf16 %v351_v39, %v350_v37  ;;  %v522_v44 = vpack.c.bf16 %v359_v40, %v358_v38  ;;  %v584_v45 = vpop.f32.mrb[4].mxu0  ;;  %v592_v46 = vpop.f32.mrb[4].mxu1 }
  0xfe   :  { %539 = vst [vmem:[%s724_s3 + $0x8] sm:$0xff] %v507_v41   ;;  %543 = vst [vmem:[%s724_s3 + $0x28] sm:$0xff] %v527_v42   ;;  %v340_v47 = vadd.f32 %v584_v45, %v466_v16  ;;  %v348_v48 = vadd.f32 %v592_v46, %v466_v16  ;;  %v229_v49 = vpop.f32.mrb[5].mxu0  ;;  %v261_v50 = vpop.f32.mrb[5].mxu1 }
  0xff   :  { %503 = vst [vmem:[%s724_s3] sm:$0xff] %v502_v43   ;;  %542 = vst [vmem:[%s724_s3 + $0x20] sm:$0xff] %v522_v44   ;;  %v338_v51 = vadd.f32 %v466_v16, %v229_v49  ;;  %v346_v52 = vadd.f32 %v466_v16, %v261_v50  ;;  %v585_v53 = vpop.f32.mrb[6].mxu0  ;;  %v593_v54 = vpop.f32.mrb[6].mxu1 }
 0x100   :  { %v341_v55 = vadd.f32 %v585_v53, %v466_v16  ;;  %v349_v56 = vadd.f32 %v593_v54, %v466_v16  ;;  %v232_v57 = vpop.f32.mrb[7].mxu0  ;;  %v264_v58 = vpop.f32.mrb[7].mxu1  ;;  %v356_v61 = vmax.f32 %v340_v47, 0.0  ;;  %v364_v62 = vmax.f32 %v348_v48, 0.0 }
 0x101   :  { %v339_v59 = vadd.f32 %v466_v16, %v232_v57  ;;  %v347_v60 = vadd.f32 %v466_v16, %v264_v58  ;;  %v354_v1 = vmax.f32 %v338_v51, 0.0  ;;  %v362_v2 = vmax.f32 %v346_v52, 0.0 }
 0x102   :  { %v357_v63 = vmax.f32 %v341_v55, 0.0  ;;  %v365_v0 = vmax.f32 %v349_v56, 0.0 }
 0x103   :  { %v355_v3 = vmax.f32 %v339_v59, 0.0  ;;  %v363_v4 = vmax.f32 %v347_v60, 0.0 }
 0x104   :  { %v517_v5 = vpack.c.bf16 %v357_v63, %v356_v61  ;;  %v537_v6 = vpack.c.bf16 %v365_v0, %v364_v62 }
 0x105   :  { %v512_v7 = vpack.c.bf16 %v355_v3, %v354_v1  ;;  %v532_v8 = vpack.c.bf16 %v363_v4, %v362_v2 }
 0x106   :  { %541 = vst [vmem:[%s724_s3 + $0x18] sm:$0xff] %v517_v5   ;;  %545 = vst [vmem:[%s724_s3 + $0x38] sm:$0xff] %v537_v6  }
 0x107   :  { %540 = vst [vmem:[%s724_s3 + $0x10] sm:$0xff] %v512_v7   ;;  %544 = vst [vmem:[%s724_s3 + $0x30] sm:$0xff] %v532_v8  }

// kernel: bottleneck_forward.4
= control target key start
LH: loop header
LB: loop body
LE: loop exit
PB: predicated region body
PF: predicated region fallthrough
CT: control target
= control target key end

     0   :  { %s477_s1 = inlined_call_operand.vmem [shape: bf16[256,128], index: 1, kind: input, shape index: {}]   ;;  %s478_s0 = inlined_call_operand.vmem [shape: bf16[32,256], index: 0, kind: input, shape index: {}]   ;;  %s479_s2 = inlined_call_operand.vmem [shape: f32[1,128], index: 2, kind: input, shape index: {}]   ;;  %s480_s3 = inlined_call_operand.vmem [shape: bf16[32,128], index: 3, kind: output, shape index: {}]  }
   0x1   :  { %v366_v0 = vld [vmem:[%s477_s1 + $0x40] sm:$0xff]   ;;  %v368_v2 = vld [vmem:[%s477_s1 + $0x48] sm:$0xff]   ;;  %v370_v4 = vld [vmem:[%s477_s1 + $0x50] sm:$0xff]  }
   0x2   :  { %v367_v1 = vld [vmem:[%s477_s1] sm:$0xff]   ;;  %322 = vmatprep.subr.bf16.mxu0 %v366_v0  ;;  %350 = vmatprep.subr.bf16.mxu1 %v366_v0  ;;  %v369_v3 = vld [vmem:[%s477_s1 + $0x8] sm:$0xff]   ;;  %v371_v5 = vld [vmem:[%s477_s1 + $0x10] sm:$0xff]  }
   0x3   :  { %323 = vmatpush3.bf16.msra.mxu0 %v367_v1  ;;  %358 = vmatpush3.bf16.msra.mxu1 %v367_v1  ;;  %v372_v6 = vld [vmem:[%s477_s1 + $0x58] sm:$0xff]   ;;  %v374_v8 = vld [vmem:[%s477_s1 + $0x60] sm:$0xff]   ;;  %v376_v10 = vld [vmem:[%s477_s1 + $0x68] sm:$0xff]  }
   0x4   :  { %324 = vmatprep.subr.bf16.mxu0 %v368_v2  ;;  %351 = vmatprep.subr.bf16.mxu1 %v368_v2  ;;  %v373_v7 = vld [vmem:[%s477_s1 + $0x18] sm:$0xff]   ;;  %v375_v9 = vld [vmem:[%s477_s1 + $0x20] sm:$0xff]   ;;  %v377_v13 = vld [vmem:[%s477_s1 + $0x28] sm:$0xff]  }
   0x5   :  { %v384_v11 = vld [vmem:[%s478_s0 + $0x4] ss:$8 sps:$4 sm:$0xff]   ;;  %v387_v12 = vld [vmem:[%s478_s0 + $0x14] ss:$8 sps:$4 sm:$0xff]   ;;  %v382_v18 = vld [vmem:[%s478_s0] ss:$8 sps:$4 sm:$0xff]  }
   0x6   :  { %v378_v14 = vld [vmem:[%s477_s1 + $0x70] sm:$0xff]   ;;  %211 = vmatprep.mubr.bf16.mxu0 %v384_v11  ;;  %219 = vmatprep.mubr.bf16.mxu1 %v387_v12  ;;  %v380_v16 = vld [vmem:[%s477_s1 + $0x78] sm:$0xff]   ;;  %v302_v23 = vld [vmem:[%s479_s2] ss:$0 sm:$0xff] }
   0x7   :  { %325 = vmatpush3.bf16.msra.mxu0 %v369_v3  ;;  %359 = vmatpush3.bf16.msra.mxu1 %v369_v3  ;;  %v379_v15 = vld [vmem:[%s477_s1 + $0x30] sm:$0xff]   ;;  %v381_v17 = vld [vmem:[%s477_s1 + $0x38] sm:$0xff]  }
   0x8   :  { %326 = vmatprep.subr.bf16.mxu0 %v370_v4  ;;  %352 = vmatprep.subr.bf16.mxu1 %v370_v4  ;;  %v385_v19 = vld [vmem:[%s478_s0 + $0x10] ss:$8 sps:$4 sm:$0xff]  }
   0xb   :  { %327 = vmatpush3.bf16.msra.mxu0 %v371_v5  ;;  %360 = vmatpush3.bf16.msra.mxu1 %v371_v5 }
   0xc   :  { %328 = vmatprep.subr.bf16.mxu0 %v372_v6  ;;  %353 = vmatprep.subr.bf16.mxu1 %v372_v6 }
   0xf   :  { %329 = vmatpush3.bf16.msra.mxu0 %v373_v7  ;;  %361 = vmatpush3.bf16.msra.mxu1 %v373_v7 }
  0x10   :  { %330 = vmatprep.subr.bf16.mxu0 %v374_v8  ;;  %354 = vmatprep.subr.bf16.mxu1 %v374_v8 }
  0x13   :  { %331 = vmatpush3.bf16.msra.mxu0 %v375_v9  ;;  %362 = vmatpush3.bf16.msra.mxu1 %v375_v9 }
  0x14   :  { %332 = vmatprep.subr.bf16.mxu0 %v376_v10  ;;  %355 = vmatprep.subr.bf16.mxu1 %v376_v10 }
  0x17   :  { %333 = vmatpush3.bf16.msra.mxu0 %v377_v13  ;;  %363 = vmatpush3.bf16.msra.mxu1 %v377_v13 }
  0x18   :  { %334 = vmatprep.subr.bf16.mxu0 %v378_v14  ;;  %356 = vmatprep.subr.bf16.mxu1 %v378_v14 }
  0x1b   :  { %335 = vmatpush3.bf16.msra.mxu0 %v379_v15  ;;  %364 = vmatpush3.bf16.msra.mxu1 %v379_v15 }
  0x1c   :  { %336 = vmatprep.subr.bf16.mxu0 %v380_v16  ;;  %357 = vmatprep.subr.bf16.mxu1 %v380_v16 }
  0x1f   :  { %337 = vmatpush3.bf16.msra.mxu0 %v381_v17  ;;  %365 = vmatpush3.bf16.msra.mxu1 %v381_v17 }
  0x22   :  { %212 = vmatmul.mubr.bf16.vlgmr.msra.gmra.mrb[0].mxu0 %v382_v18  ;;  %220 = vmatmul.mubr.bf16.vlgmr.msra.gmra.mrb[0].mxu1 %v385_v19 }
  0xf5   :  { %v338_v20 = vpop.f32.mrb[0].mxu0  ;;  %v344_v21 = vpop.f32.mrb[0].mxu1 }
  0xf6   :  { %v339_v22 = vpop.f32.mrb[1].mxu0  ;;  %v345_v24 = vpop.f32.mrb[1].mxu1 }
  0xf7   :  { %v340_v25 = vadd.f32 %v339_v22, %v338_v20  ;;  %v346_v26 = vadd.f32 %v345_v24, %v344_v21  ;;  %v341_v27 = vpop.f32.mrb[2].mxu0  ;;  %v347_v28 = vpop.f32.mrb[2].mxu1 }
  0xf8   :  { %v342_v29 = vpop.f32.mrb[3].mxu0  ;;  %v348_v30 = vpop.f32.mrb[3].mxu1 }
  0xf9   :  { %v250_v31 = vadd.f32 %v340_v25, %v302_v23  ;;  %v252_v32 = vadd.f32 %v346_v26, %v302_v23  ;;  %v343_v33 = vadd.f32 %v342_v29, %v341_v27  ;;  %v349_v34 = vadd.f32 %v348_v30, %v347_v28 }
  0xfb   :  { %v251_v35 = vadd.f32 %v343_v33, %v302_v23  ;;  %v253_v36 = vadd.f32 %v349_v34, %v302_v23  ;;  %v254_v37 = vmax.f32 %v250_v31, 0.0  ;;  %v256_v38 = vmax.f32 %v252_v32, 0.0 }
  0xfd   :  { %v255_v39 = vmax.f32 %v251_v35, 0.0  ;;  %v257_v40 = vmax.f32 %v253_v36, 0.0 }
  0xff   :  { %v314_v41 = vpack.c.bf16 %v255_v39, %v254_v37  ;;  %v319_v42 = vpack.c.bf16 %v257_v40, %v256_v38 }
 0x101   :  { %315 = vst [vmem:[%s480_s3] sm:$0xff] %v314_v41   ;;  %321 = vst [vmem:[%s480_s3 + $0x8] sm:$0xff] %v319_v42  }

// kernel: bottleneck_forward.5
= control target key start
LH: loop header
LB: loop body
LE: loop exit
PB: predicated region body
PF: predicated region fallthrough
CT: control target
= control target key end

     0   :  { %s582_s0 = inlined_call_operand.vmem [shape: bf16[32,128], index: 0, kind: input, shape index: {}]   ;;  %s583_s1 = inlined_call_operand.vmem [shape: bf16[128,128], index: 1, kind: input, shape index: {}]   ;;  %s584_s2 = inlined_call_operand.vmem [shape: bf16[32,128], index: 2, kind: input, shape index: {}]   ;;  %s585_s3 = inlined_call_operand.vmem [shape: bf16[128,128], index: 3, kind: input, shape index: {}]   ;;  %s586_s4 = inlined_call_operand.vmem [shape: f32[1,128], index: 4, kind: input, shape index: {}]   ;;  %s587_s5 = inlined_call_operand.hbm [shape: f32[32,128], index: 5, kind: output, shape index: {}]  }
   0x1   :  { %v430_v0 = vld [vmem:[%s585_s3] sm:$0xff]   ;;  %v432_v2 = vld [vmem:[%s585_s3 + $0x8] sm:$0xff]   ;;  %v434_v4 = vld [vmem:[%s585_s3 + $0x10] sm:$0xff]  }
   0x2   :  { %v431_v1 = vld [vmem:[%s583_s1] sm:$0xff]   ;;  %383 = vmatprep.subr.bf16.mxu1 %v430_v0  ;;  %v433_v3 = vld [vmem:[%s583_s1 + $0x8] sm:$0xff]   ;;  %v435_v5 = vld [vmem:[%s583_s1 + $0x10] sm:$0xff]  }
   0x3   :  { %403 = vmatprep.subr.bf16.mxu0 %v431_v1  ;;  %384 = vmatpush3.bf16.msra.mxu1 %v430_v0  ;;  %v436_v6 = vld [vmem:[%s585_s3 + $0x18] sm:$0xff]   ;;  %v438_v8 = vld [vmem:[%s585_s3 + $0x20] sm:$0xff]   ;;  %v440_v10 = vld [vmem:[%s585_s3 + $0x28] sm:$0xff]  }
   0x4   :  { %404 = vmatpush3.bf16.msra.mxu0 %v431_v1  ;;  %385 = vmatprep.subr.bf16.mxu1 %v432_v2  ;;  %v437_v7 = vld [vmem:[%s583_s1 + $0x18] sm:$0xff]   ;;  %v439_v9 = vld [vmem:[%s583_s1 + $0x20] sm:$0xff]   ;;  %v441_v11 = vld [vmem:[%s583_s1 + $0x28] sm:$0xff]  }
   0x5   :  { %405 = vmatprep.subr.bf16.mxu0 %v433_v3  ;;  %v446_v12 = vld [vmem:[%s584_s2] sm:$0xff]   ;;  %v442_v14 = vld [vmem:[%s585_s3 + $0x30] sm:$0xff]  }
   0x6   :  { %v447_v13 = vld [vmem:[%s582_s0] sm:$0xff]   ;;  %399 = vmatprep.mubr.bf16.mxu1 %v446_v12 }
   0x7   :  { %386 = vmatpush3.bf16.msra.mxu1 %v432_v2  ;;  %419 = vmatprep.mubr.bf16.mxu0 %v447_v13 }
   0x8   :  { %406 = vmatpush3.bf16.msra.mxu0 %v433_v3  ;;  %387 = vmatprep.subr.bf16.mxu1 %v434_v4 }
   0x9   :  { %407 = vmatprep.subr.bf16.mxu0 %v435_v5 }
   0xb   :  { %388 = vmatpush3.bf16.msra.mxu1 %v434_v4 }
   0xc   :  { %408 = vmatpush3.bf16.msra.mxu0 %v435_v5  ;;  %389 = vmatprep.subr.bf16.mxu1 %v436_v6 }
   0xd   :  { %409 = vmatprep.subr.bf16.mxu0 %v437_v7 }
   0xf   :  { %390 = vmatpush3.bf16.msra.mxu1 %v436_v6 }
  0x10   :  { %410 = vmatpush3.bf16.msra.mxu0 %v437_v7  ;;  %391 = vmatprep.subr.bf16.mxu1 %v438_v8 }
  0x11   :  { %411 = vmatprep.subr.bf16.mxu0 %v439_v9 }
  0x13   :  { %392 = vmatpush3.bf16.msra.mxu1 %v438_v8 }
  0x14   :  { %412 = vmatpush3.bf16.msra.mxu0 %v439_v9  ;;  %393 = vmatprep.subr.bf16.mxu1 %v440_v10 }
  0x15   :  { %10 = vsyncpa [#allocation4], 0  ;;  %413 = vmatprep.subr.bf16.mxu0 %v441_v11  ;;  %v443_v15 = vld [vmem:[%s583_s1 + $0x30] sm:$0xff]   ;;  %v444_v16 = vld [vmem:[%s585_s3 + $0x38] sm:$0xff]  }
  0x16   :  { %v445_v17 = vld [vmem:[%s583_s1 + $0x38] sm:$0xff]   ;;  %v448_v18 = vld [vmem:[%s584_s2 + $0x8] sm:$0xff]   ;;  %v362_v22 = vld [vmem:[%s586_s4] ss:$0 sm:$0xff] }
  0x17   :  { %394 = vmatpush3.bf16.msra.mxu1 %v440_v10  ;;  %v449_v19 = vld [vmem:[%s582_s0 + $0x8] sm:$0xff]   ;;  %s474_s0 = smov [#allocation3]  }
  0x18   :  { %414 = vmatpush3.bf16.msra.mxu0 %v441_v11  ;;  %395 = vmatprep.subr.bf16.mxu1 %v442_v14  ;;  %s331_s2 = sshll.u32 %s474_s0, 4  ;;  %s332_s2 = int_to_ptr.vmem [resolvable:$true] %s331_s2 }
  0x19   :  { %415 = vmatprep.subr.bf16.mxu0 %v443_v15  ;;  %s450_s4 = scalar_lea.vmem %s332_s2, 512  ;;  %p455_p1 = scmp.lt.s32.totalorder %s332_s2, %s332_s2 }
  0x1a   :  { %p451_p0 = scmp.ne.s32.totalorder %s332_s2, %s450_s4  ;;  %p456_p2 = scmp.lt.s32.totalorder %s450_s4, %s450_s4 }
  0x1b   :  { %396 = vmatpush3.bf16.msra.mxu1 %v442_v14 }
  0x1c   :  { %416 = vmatpush3.bf16.msra.mxu0 %v443_v15  ;;  %397 = vmatprep.subr.bf16.mxu1 %v444_v16  ;;  %p457_p3 = por %p456_p2, %p455_p1 }
  0x1d   :  { %417 = vmatprep.subr.bf16.mxu0 %v445_v17 }
  0x1e   :  { %p458_p4 = pnand %p457_p3, %p451_p0 }
  0x1f   :  { %398 = vmatpush3.bf16.msra.mxu1 %v444_v16 }
  0x20   :  { %418 = vmatpush3.bf16.msra.mxu0 %v445_v17 }
  0x22   :  { %400 = vmatmul.mubr.bf16.vlgmr.msra.gmra.mrb[0].mxu1 %v448_v18 }
  0x23   :  { %420 = vmatmul.mubr.bf16.vlgmr.msra.gmra.mrb[0].mxu0 %v449_v19 }
  0xf5   :  { %v401_v20 = vpop.f32.mrb[0].mxu1 }
  0xf6   :  { %v421_v21 = vpop.f32.mrb[0].mxu0  ;;  %v140_v23 = vpop.f32.mrb[1].mxu1 }
  0xf7   :  { %v294_v24 = vadd.f32 %v421_v21, %v401_v20  ;;  %v277_v25 = vpop.f32.mrb[1].mxu0  ;;  %v402_v26 = vpop.f32.mrb[2].mxu1 }
  0xf8   :  { %v292_v27 = vadd.f32 %v277_v25, %v140_v23  ;;  %v422_v28 = vpop.f32.mrb[2].mxu0  ;;  %v143_v29 = vpop.f32.mrb[3].mxu1 }
  0xf9   :  { %v316_v30 = vadd.f32 %v362_v22, %v294_v24  ;;  %v295_v31 = vadd.f32 %v422_v28, %v402_v26  ;;  %v280_v32 = vpop.f32.mrb[3].mxu0 }
  0xfa   :  { %v314_v33 = vadd.f32 %v362_v22, %v292_v27  ;;  %v293_v34 = vadd.f32 %v280_v32, %v143_v29 }
  0xfb   :  { %v320_v35 = vmax.f32 %v316_v30, 0.0  ;;  %v317_v36 = vadd.f32 %v362_v22, %v295_v31 }
  0xfc   :  { %v318_v37 = vmax.f32 %v314_v33, 0.0  ;;  %v315_v38 = vadd.f32 %v362_v22, %v293_v34 }
  0xfd   :  { %324 = vst [vmem:[#allocation3 + $0x10] sm:$0xff] %v320_v35  ;;  %v321_v39 = vmax.f32 %v317_v36, 0.0 }
  0xfe   :  { %322 = vst [vmem:[#allocation3] sm:$0xff] %v318_v37  ;;  %v319_v40 = vmax.f32 %v315_v38, 0.0 }
  0xff   :  { %325 = vst [vmem:[#allocation3 + $0x18] sm:$0xff] %v321_v39 }
 0x100   :  { %323 = vst [vmem:[#allocation3 + $0x8] sm:$0xff] %v319_v40 }
 0x101   :  { %461 = shalt.err (!%p458_p4)
}
 0x102   :  { %s462_s10 = scalar_lea.hbm %s587_s5, 512 }
 0x103   :  { %p463_p5 = scmp.ne.s32.totalorder %s587_s5, %s462_s10  ;;  %p466_p6 = scmp.lt.u32.totalorder %s462_s10, %s587_s5 }
 0x105   :  { %p468_p7 = pnand %p466_p6, %p463_p5 }
 0x107   :  { %471 = shalt.err (!%p468_p7)
}
 0x108   :  { %s475_s15 = smov 128   ;;  %s476_s16 = smov 8  }
 0x109   :  { %337 = dma.vmem_to_hbm [thread:$0]  %s332_s2, 512, %s587_s5, [#allocation4], %s475_s15, %s475_s15, %s476_s16  }
 0x10a   :  { %472 = dma.done.wait [#allocation4], 512  }
 0x10b   :  { %473 = vsyncadd [#allocation4], 4294966784 }
 0x10c   :  { %341 = vsyncpa [#allocation4], 1 }

</bundles_post_ra>
